<compile_context>
chip_gen: v6e
topology: v6e:2x2x1
jax: 0.10.0
libtpu: 0.0.40
codegen_flags: <defaults>
</compile_context>

<pallas_src>
import functools
import math

import jax
import jax.numpy as jnp
from jax.experimental import pallas as pl
from jax.experimental.pallas import tpu as pltpu

LANE = 128
SUBLANE_BF16 = 16
VMEM_LIMIT = 48 * 1024 * 1024  # safe on v5e/v6e/v7x; raise to ~96 MiB on v5e/v6e


def _round_up(x, m):
    return (x + m - 1) // m * m


def _pad2(arr, rows, cols, dtype):
    r, c = arr.shape
    return jnp.pad(arr, ((0, rows - r), (0, cols - c))).astype(dtype)


# ----------------- Stage 1: xw = X @ W  (once per layer, bf16 out) -----------------

def xw_kernel(x_ref, w_ref, o_ref):
    o_ref[...] = jnp.dot(x_ref[...], w_ref[...],
                         preferred_element_type=jnp.float32).astype(o_ref.dtype)


def feature_transform(x_p, w_p, *, block_rows):
    n_p, cin_p = x_p.shape
    cout_p = w_p.shape[1]
    return pl.pallas_call(
        xw_kernel,
        out_shape=jax.ShapeDtypeStruct((n_p, cout_p), jnp.bfloat16),
        grid=(n_p // block_rows,),
        in_specs=[
            pl.BlockSpec((block_rows, cin_p), lambda i: (i, 0)),  # X row block
            pl.BlockSpec((cin_p, cout_p), lambda i: (0, 0)),      # W (whole)
        ],
        out_specs=pl.BlockSpec((block_rows, cout_p), lambda i: (i, 0)),
        compiler_params=pltpu.CompilerParams(
            dimension_semantics=("parallel",),
            vmem_limit_bytes=VMEM_LIMIT,
        ),
    )(x_p, w_p)


# --------- Stage 2: out = A_hat @ xw + b  (row-blocked, K-tiled aggregation) ---------

def agg_kernel(a_ref, xw_ref, b_ref, o_ref, acc_ref, *, apply_relu):
    # a_ref  : [tm, tk]      bf16   (A_hat tile)
    # xw_ref : [tk, Cout_p]  bf16   (X@W tile)
    # b_ref  : [1, Cout_p]   f32
    # o_ref  : [tm, Cout_p]  out dtype (bf16 for hidden layer, f32 for last)
    # acc_ref: [tm, Cout_p]  f32 VMEM accumulator, persistent across k steps
    k = pl.program_id(1)

    @pl.when(k == 0)
    def _():
        acc_ref[...] = jnp.zeros_like(acc_ref)

    acc_ref[...] += jnp.dot(a_ref[...], xw_ref[...],
                            preferred_element_type=jnp.float32)

    @pl.when(k == pl.num_programs(1) - 1)
    def _():
        h = acc_ref[...] + b_ref[...]
        if apply_relu:
            h = jnp.maximum(h, 0.0)
        o_ref[...] = h.astype(o_ref.dtype)


def gcn_aggregate(a_p, xw_p, b_p, *, apply_relu, block_rows, block_k, out_dtype):
    n_p = a_p.shape[0]
    cout_p = xw_p.shape[1]
    grid = (n_p // block_rows, n_p // block_k)
    kernel = functools.partial(agg_kernel, apply_relu=apply_relu)
    return pl.pallas_call(
        kernel,
        out_shape=jax.ShapeDtypeStruct((n_p, cout_p), out_dtype),
        grid=grid,
        in_specs=[
            pl.BlockSpec((block_rows, block_k), lambda i, k: (i, k)),  # A_hat tile
            pl.BlockSpec((block_k, cout_p), lambda i, k: (k, 0)),      # xw tile
            pl.BlockSpec((1, cout_p), lambda i, k: (0, 0)),            # bias
        ],
        out_specs=pl.BlockSpec((block_rows, cout_p), lambda i, k: (i, 0)),
        scratch_shapes=[pltpu.VMEM((block_rows, cout_p), jnp.float32)],
        compiler_params=pltpu.CompilerParams(
            dimension_semantics=("parallel", "arbitrary"),
            vmem_limit_bytes=VMEM_LIMIT,
        ),
    )(a_p, xw_p, b_p)


# ----------------------------------- Forward -----------------------------------

def gcn_forward(a_hat, x, w1, b1, w2, b2, *, block_rows=None, block_k=None):
    n = x.shape[0]
    in_c, hid_c = w1.shape
    out_c = w2.shape[1]

    # Lane-dense padded channel dims (8 -> 128, 32 -> 128, 4 -> 128).
    in_p = _round_up(in_c, LANE)
    hid_p = _round_up(hid_c, LANE)
    out_p = _round_up(out_c, LANE)

    # Row block over output nodes; K block over A_hat columns / xw rows.
    # Realistic defaults: 256-512 rows; clamp for tiny graphs.
    if block_rows is None:
        block_rows = 256
    block_rows = min(_round_up(block_rows, SUBLANE_BF16), _round_up(n, SUBLANE_BF16))
    if block_k is None:
        block_k = 1024
    block_k = min(_round_up(block_k, LANE), _round_up(n, LANE))

    n_p = _round_up(n, math.lcm(block_rows, block_k))

    # Pad once, directly in the MXU input dtype (A_hat stream stays bf16 in HBM).
    a_p = _pad2(a_hat, n_p, n_p, jnp.bfloat16)
    x_p = _pad2(x, n_p, in_p, jnp.bfloat16)
    w1_p = _pad2(w1, in_p, hid_p, jnp.bfloat16)
    b1_p = _pad2(b1, 1, hid_p, jnp.float32)
    w2_p = _pad2(w2, hid_p, out_p, jnp.bfloat16)
    b2_p = _pad2(b2, 1, out_p, jnp.float32)

    # Layer 1: h = relu(A_hat @ (X @ W1) + b1)   (h emitted directly as bf16)
    xw1 = feature_transform(x_p, w1_p, block_rows=block_rows)
    h = gcn_aggregate(a_p, xw1, b1_p, apply_relu=True,
                      block_rows=block_rows, block_k=block_k,
                      out_dtype=jnp.bfloat16)

    # Layer 2: out = A_hat @ (h @ W2) + b2
    xw2 = feature_transform(h, w2_p, block_rows=block_rows)
    out = gcn_aggregate(a_p, xw2, b2_p, apply_relu=False,
                        block_rows=block_rows, block_k=block_k,
                        out_dtype=jnp.float32)
    return out[:n, :out_c]


# ------------------------------ plain-JAX glue ------------------------------

def build_normalized_adjacency(edge_index, num_nodes, dtype=jnp.bfloat16):
    """Dense A_hat = D^{-1/2} (A + I) D^{-1/2}, emitted directly in `dtype`."""
    src, dst = edge_index[0], edge_index[1]
    a = jnp.zeros((num_nodes, num_nodes), jnp.float32)
    a = a.at[dst, src].set(1.0)   # messages source -> target
    a = a.at[src, dst].set(1.0)   # collaboration edges treated as undirected
    a = a + jnp.eye(num_nodes, dtype=jnp.float32)   # self loops
    deg = a.sum(axis=1)
    d_inv_sqrt = jnp.where(deg > 0, 1.0 / jnp.sqrt(deg), 0.0)
    return (d_inv_sqrt[:, None] * a * d_inv_sqrt[None, :]).astype(dtype)


def glorot(key, shape):
    fan_in, fan_out = shape
    limit = jnp.sqrt(6.0 / (fan_in + fan_out))
    return jax.random.uniform(key, shape, jnp.float32, -limit, limit)


if __name__ == "__main__":
    # Small synthetic "collaboration network": 32 authors, embedding_dim = 8.
    num_nodes = 32
    in_channels = 8        # matches embedding_dim in the reference script
    hidden_channels = 32
    out_channels = 4       # number of paper categories (synthetic)

    key = jax.random.PRNGKey(0)
    k_x, k_w1, k_w2 = jax.random.split(key, 3)

    # Node features (author embeddings).
    x = jax.random.normal(k_x, (num_nodes, in_channels), jnp.float32)

    # Deterministic edge list: a ring plus a few chords.
    ring = [(i, (i + 1) % num_nodes) for i in range(num_nodes)]
    chords = [(0, 16), (4, 20), (8, 24), (12, 28), (2, 18)]
    edges = ring + chords
    edge_index = jnp.array(edges, dtype=jnp.int32).T   # [2, E]

    a_hat_bf16 = build_normalized_adjacency(edge_index, num_nodes)

    # Parameters (deterministic glorot init; GCNConv bias starts at zero).
    w1 = glorot(k_w1, (in_channels, hidden_channels))
    b1 = jnp.zeros((1, hidden_channels), jnp.float32)
    w2 = glorot(k_w2, (hidden_channels, out_channels))
    b2 = jnp.zeros((1, out_channels), jnp.float32)

    # Tiny graph: block_rows=16 / block_k=128 only to exercise the multi-step
    # pipelined grid + accumulator path.  At realistic N use the defaults
    # (block_rows 256-512, block_k 1024).
    out = gcn_forward(a_hat_bf16, x, w1, b1, w2, b2, block_rows=16, block_k=128)
    out = jax.block_until_ready(out)

    # Reference in plain f32 JAX using the same (bf16-quantized) A_hat; the
    # kernel's xw / h paths are bf16 MXU inputs, so tolerance stays loose.
    a_ref = a_hat_bf16.astype(jnp.float32)
    h_ref = jnp.maximum(a_ref @ (x @ w1) + b1, 0.0)
    out_ref = a_ref @ (h_ref @ w2) + b2
    assert out.shape == (num_nodes, out_channels)
    assert bool(jnp.allclose(out, out_ref, atol=1e-1, rtol=5e-2)), (
        jnp.max(jnp.abs(out - out_ref)))

    print("KERNEL_OK")
</pallas_src>

<mosaic_0001>
module attributes {stable_mosaic.version = 11 : i64} {
  func.func @xw_kernel(%arg0: i32, %arg1: memref<16x128xbf16, #tpu.memory_space<vmem>>, %arg2: memref<128x128xbf16, #tpu.memory_space<vmem>>, %arg3: memref<16x128xbf16, #tpu.memory_space<vmem>>) attributes {dimension_semantics = [#tpu.dimension_semantics<parallel>], iteration_bounds = array<i64: 8>, scalar_prefetch = 0 : i64, scratch_operands = 0 : i64, tpu.core_type = #tpu.core_type<tc>, window_params = [{transform_indices = @transform_0, window_bounds = array<i64: 16, 128>}, {pipeline_mode = #tpu.pipeline_mode<synchronous>, transform_indices = @transform_1, window_bounds = array<i64: 128, 128>}, {transform_indices = @transform_2, window_bounds = array<i64: 16, 128>}]} {
    %c0 = arith.constant 0 : index
    %c0_0 = arith.constant 0 : index
    %0 = vector.load %arg1[%c0, %c0_0] : memref<16x128xbf16, #tpu.memory_space<vmem>>, vector<16x128xbf16>
    %c0_1 = arith.constant 0 : index
    %c0_2 = arith.constant 0 : index
    %1 = vector.load %arg2[%c0_1, %c0_2] : memref<128x128xbf16, #tpu.memory_space<vmem>>, vector<128x128xbf16>
    %cst = arith.constant dense<0.000000e+00> : vector<16x128xf32>
    %2 = tpu.matmul %0, %1, %cst {dimension_numbers = #tpu.dot_dimension_numbers<[1], [0], [0], [1], [0, 0, 1, 1], [], []>} : vector<16x128xbf16>, vector<128x128xbf16>, vector<16x128xf32> -> vector<16x128xf32>
    %3 = arith.truncf %2 : vector<16x128xf32> to vector<16x128xbf16>
    %c0_3 = arith.constant 0 : index
    %c0_4 = arith.constant 0 : index
    %4 = vector.load %arg3[%c0_3, %c0_4] : memref<16x128xbf16, #tpu.memory_space<vmem>>, vector<16x128xbf16>
    tpu.vector_store %arg3[%c0_3, %c0_4], %3 {strides = array<i32>} : memref<16x128xbf16, #tpu.memory_space<vmem>>, vector<16x128xbf16>,
    return
  }
  func.func @transform_0(%arg0: i32) -> (i32, i32) {
    %c0_i32 = arith.constant 0 : i32
    %c0_i32_0 = arith.constant 0 : i32
    return %arg0, %c0_i32 : i32, i32
  }
  func.func @transform_1(%arg0: i32) -> (i32, i32) {
    %c0_i32 = arith.constant 0 : i32
    %c0_i32_0 = arith.constant 0 : i32
    %c0_i32_1 = arith.constant 0 : i32
    return %c0_i32, %c0_i32_0 : i32, i32
  }
  func.func @transform_2(%arg0: i32) -> (i32, i32) {
    %c0_i32 = arith.constant 0 : i32
    %c0_i32_0 = arith.constant 0 : i32
    return %arg0, %c0_i32 : i32, i32
  }
}

</mosaic_0001>

<bundles_post_ra>
// kernel: tpu_custom_call.1
= control target key start
LH: loop header
LB: loop body
LE: loop exit
PB: predicated region body
PF: predicated region fallthrough
CT: control target
= control target key end

     0   :  { %7 = vsyncpa [#allocation3], 0  ;;  %s873_s0 = inlined_call_operand.hbm [shape: bf16[128,128], index: 0, kind: input, shape index: {}]   ;;  %s874_s1 = inlined_call_operand.hbm [shape: bf16[128,128], index: 1, kind: input, shape index: {}]   ;;  %s875_s2 = inlined_call_operand.hbm [shape: bf16[128,128], index: 2, kind: output, shape index: {}]  }
   0x1   :  { %9 = vsyncpa [#allocation3 + $0x1], 0 }
   0x2   :  { %10 = vsyncpa [#allocation6], 0 }
   0x3   :  { %11 = vsyncpa [#allocation4], 0 }
   0x4   :  { %13 = vsyncpa [#allocation4 + $0x1], 0  ;;  %s685_s9 = smov 0   ;;  %s687_s10 = smov 0  }
   0x5   :  { %s689_s11 = smov 0   ;;  %s691_s12 = smov 0  }
   0x6 LB: > { %s706_s13 = sadd.s32 4294967295, %s659_s12   ;;  %s400_s14 = sadd.s32 4294967294, %s659_s12   ;;  %s659_s12 = sphi %s691_s12, %s896_s12   ;;  %s655_s11 = sphi %s689_s11, %s895_s11   ;;  %s651_s10 = sphi %s687_s10, %s894_s10   ;;  %s647_s9 = sphi %s685_s9, %s893_s9  }
   0x7   : > { %p39_p0 = scmp.ne.s32.totalorder %s651_s10, %s647_s9  ;;  %p876_p1 = scmp.eq.s32.totalorder %s706_s13, 0 }
   0x8   : > { %p90_p3 = scmp.eq.s32.totalorder %s400_s14, 7  ;;  %p401_p5 = scmp.ge.s32.totalorder %s659_s12, 1 }
   0x9   : > { %p715_p4 = por %p876_p1, %p39_p0  ;;  %p97_p7 = scmp.lt.s32.totalorder %s659_s12, 9 }
   0xa   : > { %p720_p6 = por %p90_p3, %p39_p0  ;;  %s661_s18 = smov [#allocation5]  }
   0xb   : > { %s880_s15 = scalar_select %p715_p4, 1, 0 }
   0xc   : > { %s881_s16 = scalar_select %p720_p6, 1, 0 }
   0xd   : > { %p725_p8 = pnand %p401_p5, %p97_p7  ;;  %s109_s19 = sshll.u32 %s661_s18, 4  ;;  %s110_s19 = int_to_ptr.vmem [resolvable:$true] %s109_s19 }
   0xe   : > { %s738_s21 = sadd.s32 1, %s659_s12   ;;  %s26_s22 = sadd.s32 1, %s655_s11 }
   0xf   : > { %s882_s17 = scalar_select %p725_p8, 1, 0 }
  0x10   : > { %p473_p9 = pneg %p725_p8  ;;  %s23_s23 = ssub.s32 %s659_s12, %s738_s21 }
  0x11   : > { %s548_s24 = scalar_lea.vmem %s110_s19, 1024  ;;  %p556_p3 = scmp.lt.s32.totalorder %s110_s19, %s110_s19 }
  0x12   : > { %p733_p10 = pnand %p473_p9, %p876_p1  ;;  %p549_p12 = scmp.ne.s32.totalorder %s110_s19, %s548_s24 }
  0x13   : > { %p557_p5 = scmp.lt.s32.totalorder %s548_s24, %s548_s24 }
  0x14   : > { %p539_p11 = pneg %p733_p10 }
  0x15   : > { %p558_p7 = por %p557_p5, %p556_p3 }
  0x16   : > { %p551_p13 = pnand %p549_p12, %p539_p11 }
  0x18   : > { %p552_p0 = pneg %p551_p13 }
  0x1a   : > { %p559_p2 = pnand %p558_p7, %p552_p0 }
  0x1c   : > { %562 = shalt.err (!%p559_p2)
}
  0x1d   : > { %s662_s25 = smov 64   ;;  %s663_s26 = smov 4  }
  0x1e   : > { %476 = dma.hbm_to_vmem [thread:$0]  (!%p733_p10), %s874_s1, 1024, %s110_s19, [#allocation6], %s662_s25, %s662_s25, %s663_s26  }
  0x1f   : > { %p24_p2 = scmp.eq.s32.totalorder %s23_s23, 0  ;;  %p33_p9 = scmp.ne.s32.totalorder %s655_s11, %s651_s10 }
  0x20   : > { %p34_p11 = scmp.eq.s32.totalorder %s659_s12, 0  ;;  %p486_p12 = scmp.lt.s32.totalorder %s659_s12, 8 }
  0x21   : > { %s758_s29 = scalar_select %p24_p2, %s655_s11, %s26_s22  }
  0x22   : > { %p35_p13 = por %p34_p11, %p33_p9  ;;  %p884_p0 = scmp.eq.s32.totalorder %s706_s13, 7 }
  0x23   : > { %s123_s3 = sand.u32 1, %s655_s11   ;;  %s427_s4 = sshll.u32 %s659_s12, 7 }
  0x24   : > { %p762_p3 = por %p884_p0, %p33_p9  ;;  %s404_s5 = sshll.u32 %s123_s3, 3 }
  0x25   : > { %s771_s8 = scalar_lea.hbm %s873_s0, %s427_s4  ;;  %s127_s14 = scalar_lea.vmem [#allocation2], %s404_s5 }
  0x26   : > { %s885_s30 = scalar_select %p762_p3, 1, 0 }
  0x27   : > { %s134_s18 = sshll.u32 %s127_s14, 4  ;;  %p773_p10 = pnand %p486_p12, %p35_p13  ;;  %s777_s18 = int_to_ptr.vmem [resolvable:$true] %s134_s18 }
  0x28   : > { %s779_s20 = scalar_lea.sflag [#allocation3], %s123_s3  ;;  %s563_s22 = scalar_lea.hbm %s771_s8, 128 }
  0x29   : > { %p564_p5 = scmp.ne.s32.totalorder %s771_s8, %s563_s22  ;;  %p565_p7 = pneg %p773_p10 }
  0x2a   : > { %s568_s27 = scalar_lea.hbm %s873_s0, 1024  ;;  %p569_p11 = scmp.lt.s32.totalorder %s771_s8, %s873_s0 }
  0x2b   : > { %p566_p2 = pnand %p565_p7, %p564_p5  ;;  %p570_p12 = scmp.lt.s32.totalorder %s568_s27, %s563_s22 }
  0x2d   : > { %p567_p9 = pneg %p566_p2  ;;  %p571_p13 = por %p570_p12, %p569_p11 }
  0x2f   : > { %p572_p0 = pnand %p571_p13, %p567_p9 }
  0x31   : > { %575 = shalt.err (!%p572_p0)
}
  0x32   : > { %s576_s3 = scalar_lea.vmem %s777_s18, 128  ;;  %s664_s5 = smov [#allocation2]  }
  0x33   : > { %p577_p1 = scmp.ne.s32.totalorder %s777_s18, %s576_s3  ;;  %s581_s6 = sshll.u32 %s664_s5, 4  ;;  %s582_s6 = int_to_ptr.vmem [resolvable:$false] %s581_s6 }
  0x34   : > { %s583_s7 = scalar_lea.vmem %s582_s6, 256  ;;  %p584_p2 = scmp.lt.s32.totalorder %s777_s18, %s582_s6 }
  0x35   : > { %p579_p6 = pnand %p577_p1, %p565_p7  ;;  %p585_p3 = scmp.lt.s32.totalorder %s583_s7, %s576_s3 }
  0x37   : > { %p580_p5 = pneg %p579_p6  ;;  %p586_p4 = por %p585_p3, %p584_p2 }
  0x39   : > { %p587_p8 = pnand %p586_p4, %p580_p5 }
  0x3b   : > { %590 = shalt.err (!%p587_p8)
}
  0x3c   : > { %480 = dma.hbm_to_vmem [thread:$0]  (!%p773_p10), %s771_s8, 128, %s777_s18, %s779_s20, %s662_s25, %s662_s25, %s663_s26  }
  0x3d   : > { %p887_p1 = scmp.ne.s32.totalorder %s882_s17, 0 }
  0x3e   : > { %s806_s14 = sand.u32 (!%p887_p1), 1, %s651_s10   ;;  %p888_p4 = scmp.ne.s32.totalorder (!%p887_p1), %s880_s15, 0 }
  0x3f   : > { %146 = sbr.rel (%p887_p1) target bundleno = 318 (0x13e), region = 28  ;;  %s408_s22 = sshll.u32 (!%p887_p1), %s806_s14, 3 }
  0x40   : > { %s149_s23 = scalar_lea.sflag (!%p887_p1), [#allocation3], %s806_s14  ;;  %s812_s19 = scalar_lea.vmem (!%p887_p1), [#allocation2], %s408_s22 }
  0x44   : > { %634 = dma.done.wait (%p888_p4), %s149_s23, 128  }
  0x45   : > { %636 = vsyncadd (%p888_p4), %s149_s23, 4294967168  ;;  %p889_p6 = scmp.eq.s32.totalorder %s706_s13, 0 }
  0x47   : > { %638 = dma.done.wait (%p889_p6), [#allocation6], 1024   ;;  %p890_p8 = pmov %p889_p6 }
  0x48   : > { %v665_v0 = vmov 0.0   ;;  %vm666_vm0 = vmmov 0   ;;  %v528_v1 = vld [vmem:[#allocation5 + $0x38] sm:$0xff]   ;;  %v529_v2 = vld [vmem:[#allocation5 + $0x30] sm:$0xff]   ;;  %v530_v3 = vld [vmem:[#allocation5 + $0x28] sm:$0xff]   ;;  %s176_s15 = scalar_lea.vmem [#allocation7], %s408_s22 }
  0x49   : > { %640 = vsyncadd (%p890_p8), [#allocation6], 4294966272  ;;  %445 = vmatprep.subr.bf16.mxu0 %v665_v0  ;;  %461 = vmatprep.mubr.msk.bf16.mxu0 %vm666_vm0, %v665_v0  ;;  %v531_v4 = vld [vmem:[#allocation5 + $0x20] sm:$0xff]   ;;  %v532_v5 = vld [vmem:[#allocation5 + $0x18] sm:$0xff]   ;;  %s317_s17 = sshll.u32 %s176_s15, 4  ;;  %s430_s25 = sshll.u32 %s706_s13, 7  ;;  %s826_s17 = int_to_ptr.vmem [resolvable:$true] %s317_s17 }
  0x4a   : > { %446 = vmatpush3.bf16.msra.mxu0 %v528_v1  ;;  %v533_v6 = vld [vmem:[#allocation5 + $0x10] sm:$0xff]   ;;  %v534_v7 = vld [vmem:[#allocation5 + $0x8] sm:$0xff]   ;;  %v535_v8 = vld [vmem:[#allocation5] sm:$0xff]   ;;  %s831_s18 = scalar_lea.hbm %s875_s2, %s430_s25  ;;  %s304_s20 = scalar_lea.sflag [#allocation4], %s806_s14 }
  0x4b   : > { %447 = vmatprep.subr.bf16.mxu0 %v665_v0  ;;  %v536_v9 = vld [vmem:[%s812_s19] sm:$0xff]   ;;  %s591_s24 = scalar_lea.vmem %s826_s17, 128  ;;  %p891_p10 = scmp.ne.s32.totalorder %s885_s30, 0 }
  0x4c   : > { %p592_p3 = scmp.ne.s32.totalorder %s826_s17, %s591_s24  ;;  %s667_s13 = smov [#allocation7]  }
  0x4d   : > { %s595_s27 = sshll.u32 %s667_s13, 4  ;;  %s596_s27 = int_to_ptr.vmem [resolvable:$false] %s595_s27 }
  0x4e   : > { %448 = vmatpush3.bf16.msra.mxu0 %v529_v2  ;;  %p593_p7 = pnand %p592_p3, %p891_p10  ;;  %s597_s28 = scalar_lea.vmem %s596_s27, 256 }
  0x4f   : > { %449 = vmatprep.subr.bf16.mxu0 %v665_v0  ;;  %p598_p11 = scmp.lt.s32.totalorder %s826_s17, %s596_s27  ;;  %p599_p12 = scmp.lt.s32.totalorder %s597_s28, %s591_s24 }
  0x50   : > { %p594_p9 = pneg %p593_p7 }
  0x51   : > { %p600_p13 = por %p599_p12, %p598_p11 }
  0x52   : > { %450 = vmatpush3.bf16.msra.mxu0 %v530_v3 }
  0x53   : > { %451 = vmatprep.subr.bf16.mxu0 %v665_v0  ;;  %p601_p0 = pnand %p600_p13, %p594_p9 }
  0x56   : > { %452 = vmatpush3.bf16.msra.mxu0 %v531_v4 }
  0x57   : > { %453 = vmatprep.subr.bf16.mxu0 %v665_v0 }
  0x5a   : > { %454 = vmatpush3.bf16.msra.mxu0 %v532_v5 }
  0x5b   : > { %455 = vmatprep.subr.bf16.mxu0 %v665_v0 }
  0x5e   : > { %456 = vmatpush3.bf16.msra.mxu0 %v533_v6 }
  0x5f   : > { %457 = vmatprep.subr.bf16.mxu0 %v665_v0 }
  0x62   : > { %458 = vmatpush3.bf16.msra.mxu0 %v534_v7 }
  0x63   : > { %459 = vmatprep.subr.bf16.mxu0 %v665_v0 }
  0x66   : > { %460 = vmatpush3.bf16.msra.mxu0 %v535_v8 }
  0x69   : > { %462 = vmatmul.mubr.bf16.vlgmr.msra.gmra.mxu0 %v536_v9 }
 0x129   : > { %v286_v10 = vpop.f32.mrf.mxu0 }
 0x12b   : > { %v463_v11 = vpop.f32.mrf.mxu0 }
 0x12d   : > { %v289_v12 = vpop.f32.mrf.mxu0 }
 0x12e   : > { %v434_v13 = vpack.c.bf16 %v289_v12, %v286_v10 }
 0x12f   : > { %v464_v14 = vpop.f32.mrf.mxu0 }
 0x130   : > { %435 = vst [vmem:[%s176_s15] sm:$0xff] %v434_v13  }
 0x131   : > { %604 = shalt.err (!%p601_p0)
}
 0x132   : > { %s605_s4 = scalar_lea.hbm %s831_s18, 128  ;;  %s609_s6 = scalar_lea.hbm %s875_s2, 1024 }
 0x133   : > { %p606_p5 = scmp.ne.s32.totalorder %s831_s18, %s605_s4  ;;  %p610_p4 = scmp.lt.s32.totalorder %s831_s18, %s875_s2 }
 0x134   : > { %p611_p6 = scmp.lt.s32.totalorder %s609_s6, %s605_s4 }
 0x135   : > { %p607_p2 = pnand %p606_p5, %p891_p10 }
 0x136   : > { %p612_p8 = por %p611_p6, %p610_p4 }
 0x137   : > { %p608_p1 = pneg %p607_p2 }
 0x139   : > { %p613_p3 = pnand %p612_p8, %p608_p1 }
 0x13b   : > { %616 = shalt.err (!%p613_p3)
}
 0x13c   : > { %s668_s23 = smov 64   ;;  %s669_s19 = smov 4  }
 0x13d   : > { %471 = dma.vmem_to_hbm [thread:$0]  (%p891_p10), %s826_s17, 128, %s831_s18, %s304_s20, %s668_s23, %s668_s23, %s669_s19  }
 0x13e PF: > { %p488_p7 = scmp.ge.s32.totalorder %s659_s12, 2  ;;  %s332_s15 = sand.u32 1, %s647_s9  }
 0x13f   : > { %p892_p9 = scmp.ne.s32.totalorder %s881_s16, 0  ;;  %s333_s25 = scalar_lea.sflag [#allocation4], %s332_s15 }
 0x141   : > { %p482_p11 = pnand %p488_p7, %p892_p9 }
 0x143   : > { %p483_p12 = pneg %p482_p11 }
 0x145   : > { %642 = dma.done.wait (%p483_p12), %s333_s25, 128  }
 0x146   : > { %644 = vsyncadd (%p483_p12), %s333_s25, 4294967168  ;;  %p16_p13 = scmp.ge.s32.totalorder %s738_s21, 10   ;;  %s893_s9 = smov %s651_s10 }
 0x147   : > { %s894_s10 = smov %s655_s11  ;;  %s895_s11 = smov %s758_s29 }
 0x148   : > { %s896_s12 = smov %s738_s21  ;;  %18 = sbr.rel (!%p16_p13) target bundleno = 6 (0x6), region = 77 }
 0x14d   :  { %338 = vsyncpa [#allocation3], 1 }
 0x14e   :  { %340 = vsyncpa [#allocation3 + $0x1], 1 }
 0x14f   :  { %341 = vsyncpa [#allocation6], 1 }
 0x150   :  { %342 = vsyncpa [#allocation4], 1 }
 0x151   :  { %344 = vsyncpa [#allocation4 + $0x1], 1 }

</bundles_post_ra>
